<compile_context>
chip_gen: v6e
topology: v6e:2x2x1
jax: 0.10.0
libtpu: 0.0.40
codegen_flags: <defaults>
</compile_context>

<pallas_src>
import functools
import math

import jax
import jax.numpy as jnp
from jax.experimental import pallas as pl
from jax.experimental.pallas import tpu as pltpu

MXU_DTYPE = jnp.bfloat16            # operands fed to the MXU (accumulation stays f32)
VMEM_LIMIT = 48 * 1024 * 1024       # scoped-VMEM budget (< v7x 64 MiB physical)


# ----------------------------------------------------------------------------
# Fully fused encoder-layer kernel.  One grid step = one batch element.
# ----------------------------------------------------------------------------
def _xl_layer_kernel(cat_ref, r_ref, wqkv_ref, wr_ref, u_ref, v_ref, mask_ref,
                     wo_ref, gamma_ref, beta_ref, w1_ref, b1_ref, w2_ref, b2_ref,
                     o_ref, bd_scr, *, mem_len, n_heads, k_dim):
    HK = n_heads * k_dim
    S = cat_ref.shape[1]
    T = S - mem_len
    scale = 1.0 / math.sqrt(k_dim)

    cat = cat_ref[0]                                     # [S, D] f32 (= [last_src | src])
    cat_bf = cat.astype(MXU_DTYPE)

    # Fused QKV projection (Q computed over the full cat; its first mem_len rows
    # are simply unused).  One MXU dot instead of three launches.
    qkv = jnp.dot(cat_bf, wqkv_ref[...], preferred_element_type=jnp.float32)    # [S, 3HK]
    # Relative positional projection.  Batch-independent; recomputed per grid
    # step (negligible for small B).
    # TODO(synk): hoist R @ Wr into its own matmul launch when B is large.
    rk = jnp.dot(r_ref[...].astype(MXU_DTYPE), wr_ref[...],
                 preferred_element_type=jnp.float32)                             # [S, HK]

    q = qkv[mem_len:, 0:HK]                              # [T, HK] f32 (current segment)
    k_bf = qkv[:, HK:2 * HK].astype(MXU_DTYPE)           # [S, HK]
    v_bf = qkv[:, 2 * HK:3 * HK].astype(MXU_DTYPE)       # [S, HK]
    rk_bf = rk.astype(MXU_DTYPE)

    qu_bf = (q + u_ref[...]).astype(MXU_DTYPE)           # hoisted (q + u), all heads
    qv_bf = (q + v_ref[...]).astype(MXU_DTYPE)           # hoisted (q + v), all heads
    mask = mask_ref[...]                                 # [T, S] additive mask (f32)

    bd_scr[...] = jnp.zeros(bd_scr.shape, bd_scr.dtype)  # zero the padded tail once

    ctx_heads = []
    for h in range(n_heads):
        sl = slice(h * k_dim, (h + 1) * k_dim)
        ac = jax.lax.dot_general(qu_bf[:, sl], k_bf[:, sl],
                                 (((1,), (1,)), ((), ())),
                                 preferred_element_type=jnp.float32)      # [T, S]
        bd_raw = jax.lax.dot_general(qv_bf[:, sl], rk_bf[:, sl],
                                     (((1,), (1,)), ((), ())),
                                     preferred_element_type=jnp.float32)  # [T, S]

        # Transformer-XL relative shift, O(T*S):  bd[i, j] = bd_raw[i, j + (T-1) - i].
        # Per-row shifted-window reads from a zero-padded VMEM scratch; overflow
        # columns are zeros and land only in the causally-masked region.
        # TODO(synk): for long T replace the unrolled row windows with a strided
        # pltpu.roll shift.
        bd_scr[:, pl.ds(0, S)] = bd_raw
        bd = jnp.concatenate(
            [bd_scr[pl.ds(i, 1), pl.ds(T - 1 - i, S)] for i in range(T)], axis=0)

        scores = (ac + bd) * scale + mask                # f32
        m = jnp.max(scores, axis=-1, keepdims=True)
        p = jnp.exp(scores - m)
        denom = jnp.sum(p, axis=-1, keepdims=True)
        p = p * pl.reciprocal(denom, approx=True)        # EUP vrcp (free slot)
        ctx_heads.append(jnp.dot(p.astype(MXU_DTYPE), v_bf[:, sl],
                                 preferred_element_type=jnp.float32))     # [T, K]

    ctx = jnp.concatenate(ctx_heads, axis=1)             # [T, HK] lane-dense
    attn = jnp.dot(ctx.astype(MXU_DTYPE), wo_ref[...],
                   preferred_element_type=jnp.float32)   # fused output projection [T, D]

    # Fused epilogue: residual + LayerNorm (eps = 1e-5) + position-wise FFN (f32 math).
    x = cat[mem_len:, :] + attn                          # src + attn
    mean = jnp.mean(x, axis=-1, keepdims=True)
    var = jnp.mean(jnp.square(x - mean), axis=-1, keepdims=True)
    y = (x - mean) * jax.lax.rsqrt(var + 1e-5)
    y = y * gamma_ref[...] + beta_ref[...]
    hid = jnp.dot(y.astype(MXU_DTYPE), w1_ref[...],
                  preferred_element_type=jnp.float32) + b1_ref[...]
    hid = jnp.maximum(hid, 0.0)                          # ReLU
    out = jnp.dot(hid.astype(MXU_DTYPE), w2_ref[...],
                  preferred_element_type=jnp.float32) + b2_ref[...]
    o_ref[0] = out.astype(o_ref.dtype)


# ----------------------------------------------------------------------------
# Full encoder-layer forward (wrapper glue: concat / reshape only).
# ----------------------------------------------------------------------------
def xl_encoder_layer_forward(params, last_src, src, R, u_vec, v_vec, mask):
    B, T, D = src.shape
    M = last_src.shape[1]
    S = M + T
    H, K = u_vec.shape
    HK = H * K
    F = params["w1"].shape[1]

    cat = jnp.concatenate([last_src, src], axis=1)                       # [B, S, D] f32
    u_flat = u_vec.reshape(1, HK).astype(jnp.float32)
    v_flat = v_vec.reshape(1, HK).astype(jnp.float32)

    kernel = functools.partial(_xl_layer_kernel, mem_len=M, n_heads=H, k_dim=K)
    const2 = lambda b: (0, 0)

    out = pl.pallas_call(
        kernel,
        out_shape=jax.ShapeDtypeStruct((B, T, D), jnp.float32),
        grid=(B,),
        in_specs=[
            pl.BlockSpec((1, S, D), lambda b: (b, 0, 0)),   # cat = [last_src | src]
            pl.BlockSpec((S, D), const2),                   # R (relative encodings)
            pl.BlockSpec((D, 3 * HK), const2),              # fused Wq|Wk|Wv (resident)
            pl.BlockSpec((D, HK), const2),                  # Wr (resident)
            pl.BlockSpec((1, HK), const2),                  # u bias (head-major flat)
            pl.BlockSpec((1, HK), const2),                  # v bias
            pl.BlockSpec((T, S), const2),                   # additive mask (f32)
            pl.BlockSpec((HK, D), const2),                  # Wo (resident)
            pl.BlockSpec((1, D), const2),                   # gamma
            pl.BlockSpec((1, D), const2),                   # beta
            pl.BlockSpec((D, F), const2),                   # W1 (resident)
            pl.BlockSpec((1, F), const2),                   # b1
            pl.BlockSpec((F, D), const2),                   # W2 (resident)
            pl.BlockSpec((1, D), const2),                   # b2
        ],
        out_specs=pl.BlockSpec((1, T, D), lambda b: (b, 0, 0)),          # lane-dense [T, D]
        scratch_shapes=[pltpu.VMEM((T, S + T), jnp.float32)],            # padded BD scratch
        compiler_params=pltpu.CompilerParams(
            dimension_semantics=("parallel",),
            vmem_limit_bytes=VMEM_LIMIT,
        ),
    )(cat, R.astype(jnp.float32), params["w_qkv"], params["wr"],
      u_flat, v_flat, mask.astype(jnp.float32), params["wo"],
      params["gamma"], params["beta"],
      params["w1"], params["b1"], params["w2"], params["b2"])
    # TODO(synk): dropout(p_drop) omitted (identity in deterministic / eval mode).
    return out


def init_params(key, D, H, K, F):
    HK = H * K
    ks = jax.random.split(key, 7)
    s = 0.02
    wq = s * jax.random.normal(ks[0], (D, HK), jnp.float32)
    wk = s * jax.random.normal(ks[1], (D, HK), jnp.float32)
    wv = s * jax.random.normal(ks[2], (D, HK), jnp.float32)
    wr = s * jax.random.normal(ks[3], (D, HK), jnp.float32)
    wo = s * jax.random.normal(ks[4], (HK, D), jnp.float32)
    w1 = s * jax.random.normal(ks[5], (D, F), jnp.float32)
    w2 = s * jax.random.normal(ks[6], (F, D), jnp.float32)
    return dict(
        w_qkv=jnp.concatenate([wq, wk, wv], axis=1).astype(MXU_DTYPE),  # [D, 3*HK]
        wr=wr.astype(MXU_DTYPE),
        wo=wo.astype(MXU_DTYPE),
        gamma=jnp.ones((1, D), jnp.float32),
        beta=jnp.zeros((1, D), jnp.float32),
        w1=w1.astype(MXU_DTYPE),
        b1=jnp.zeros((1, F), jnp.float32),
        w2=w2.astype(MXU_DTYPE),
        b2=jnp.zeros((1, D), jnp.float32),
    )


# Pure-JAX reference (same math, f32) used as a sanity check.
def reference_forward(params, last_src, src, R, u_vec, v_vec, mask):
    f32 = jnp.float32
    B, T, D = src.shape
    M = last_src.shape[1]
    S = M + T
    H, K = u_vec.shape
    HK = H * K
    cat = jnp.concatenate([last_src, src], axis=1)
    qkv = jnp.einsum("bsd,de->bse", cat, params["w_qkv"].astype(f32))
    q = qkv[:, M:, :HK].reshape(B, T, H, K)
    k = qkv[:, :, HK:2 * HK].reshape(B, S, H, K)
    v = qkv[:, :, 2 * HK:].reshape(B, S, H, K)
    rk = (R @ params["wr"].astype(f32)).reshape(S, H, K)
    u = u_vec.astype(f32).reshape(1, 1, H, K)
    vb = v_vec.astype(f32).reshape(1, 1, H, K)
    ac = jnp.einsum("bthk,bshk->bhts", q + u, k)
    bd_raw = jnp.einsum("bthk,shk->bhts", q + vb, rk)
    idx = jnp.arange(S)[None, :] + (T - 1) - jnp.arange(T)[:, None]
    idx = jnp.clip(idx, 0, S - 1)
    bd = jnp.take_along_axis(bd_raw, jnp.broadcast_to(idx[None, None], bd_raw.shape), axis=-1)
    scores = (ac + bd) / math.sqrt(K) + mask[None, None]
    p = jax.nn.softmax(scores, axis=-1)
    ctx = jnp.einsum("bhts,bshk->bthk", p, v).reshape(B, T, HK)
    attn = ctx @ params["wo"].astype(f32)
    x = src + attn
    mean = x.mean(-1, keepdims=True)
    var = jnp.square(x - mean).mean(-1, keepdims=True)
    y = (x - mean) * jax.lax.rsqrt(var + 1e-5) * params["gamma"][0] + params["beta"][0]
    h = jnp.maximum(y @ params["w1"].astype(f32) + params["b1"][0], 0.0)
    return h @ params["w2"].astype(f32) + params["b2"][0]


if __name__ == "__main__":
    # config: head=2, d_model=32, k_dim=16, d_ff=64, p_drop=0.0
    B, T, M = 2, 8, 8
    H, K = 2, 16
    D, F = 32, 64
    S = M + T

    key = jax.random.PRNGKey(0)
    kp, k1, k2, k3, k4, k5 = jax.random.split(key, 6)

    params = init_params(kp, D, H, K, F)
    last_src = jax.random.normal(k1, (B, M, D), jnp.float32)   # memory from prev segment
    src = jax.random.normal(k2, (B, T, D), jnp.float32)        # current segment
    R = jax.random.normal(k3, (S, D), jnp.float32)             # relative positional encodings
    u_vec = 0.02 * jax.random.normal(k4, (H, K), jnp.float32)  # content bias
    v_vec = 0.02 * jax.random.normal(k5, (H, K), jnp.float32)  # position bias

    # causal mask with memory: query i may attend key j iff j <= M + i (additive, f32)
    i_idx = jnp.arange(T)[:, None]
    j_idx = jnp.arange(S)[None, :]
    mask = jnp.where(j_idx <= (M + i_idx), 0.0, -1e30).astype(jnp.float32)  # [T, S]

    fwd = jax.jit(xl_encoder_layer_forward)
    out = jax.block_until_ready(fwd(params, last_src, src, R, u_vec, v_vec, mask))

    assert out.shape == (B, T, D)
    assert bool(jnp.all(jnp.isfinite(out)))

    ref = reference_forward(params, last_src, src, R, u_vec, v_vec, mask)
    err = float(jnp.max(jnp.abs(out - ref)))
    assert err < 5e-2, f"mismatch vs reference: {err}"

    print("KERNEL_OK")
</pallas_src>

<mosaic_0001>
module attributes {stable_mosaic.version = 11 : i64} {
  func.func @_xl_layer_kernel(%arg0: i32, %arg1: memref<1x16x32xf32, #tpu.memory_space<vmem>>, %arg2: memref<16x32xf32, #tpu.memory_space<vmem>>, %arg3: memref<32x96xbf16, #tpu.memory_space<vmem>>, %arg4: memref<32x32xbf16, #tpu.memory_space<vmem>>, %arg5: memref<1x32xf32, #tpu.memory_space<vmem>>, %arg6: memref<1x32xf32, #tpu.memory_space<vmem>>, %arg7: memref<8x16xf32, #tpu.memory_space<vmem>>, %arg8: memref<32x32xbf16, #tpu.memory_space<vmem>>, %arg9: memref<1x32xf32, #tpu.memory_space<vmem>>, %arg10: memref<1x32xf32, #tpu.memory_space<vmem>>, %arg11: memref<32x64xbf16, #tpu.memory_space<vmem>>, %arg12: memref<1x64xf32, #tpu.memory_space<vmem>>, %arg13: memref<64x32xbf16, #tpu.memory_space<vmem>>, %arg14: memref<1x32xf32, #tpu.memory_space<vmem>>, %arg15: memref<1x8x32xf32, #tpu.memory_space<vmem>>, %arg16: memref<8x24xf32, #tpu.memory_space<vmem>>) attributes {dimension_semantics = [#tpu.dimension_semantics<parallel>], iteration_bounds = array<i64: 2>, scalar_prefetch = 0 : i64, scratch_operands = 1 : i64, tpu.core_type = #tpu.core_type<tc>, window_params = [{transform_indices = @transform_0, window_bounds = array<i64: 1, 16, 32>}, {pipeline_mode = #tpu.pipeline_mode<synchronous>, transform_indices = @transform_1, window_bounds = array<i64: 16, 32>}, {pipeline_mode = #tpu.pipeline_mode<synchronous>, transform_indices = @transform_2, window_bounds = array<i64: 32, 96>}, {pipeline_mode = #tpu.pipeline_mode<synchronous>, transform_indices = @transform_3, window_bounds = array<i64: 32, 32>}, {pipeline_mode = #tpu.pipeline_mode<synchronous>, transform_indices = @transform_4, window_bounds = array<i64: 1, 32>}, {pipeline_mode = #tpu.pipeline_mode<synchronous>, transform_indices = @transform_5, window_bounds = array<i64: 1, 32>}, {pipeline_mode = #tpu.pipeline_mode<synchronous>, transform_indices = @transform_6, window_bounds = array<i64: 8, 16>}, {pipeline_mode = #tpu.pipeline_mode<synchronous>, transform_indices = @transform_7, window_bounds = array<i64: 32, 32>}, {pipeline_mode = #tpu.pipeline_mode<synchronous>, transform_indices = @transform_8, window_bounds = array<i64: 1, 32>}, {pipeline_mode = #tpu.pipeline_mode<synchronous>, transform_indices = @transform_9, window_bounds = array<i64: 1, 32>}, {pipeline_mode = #tpu.pipeline_mode<synchronous>, transform_indices = @transform_10, window_bounds = array<i64: 32, 64>}, {pipeline_mode = #tpu.pipeline_mode<synchronous>, transform_indices = @transform_11, window_bounds = array<i64: 1, 64>}, {pipeline_mode = #tpu.pipeline_mode<synchronous>, transform_indices = @transform_12, window_bounds = array<i64: 64, 32>}, {pipeline_mode = #tpu.pipeline_mode<synchronous>, transform_indices = @transform_13, window_bounds = array<i64: 1, 32>}, {transform_indices = @transform_14, window_bounds = array<i64: 1, 8, 32>}]} {
    %c0 = arith.constant 0 : index
    %c0_0 = arith.constant 0 : index
    %c0_1 = arith.constant 0 : index
    %0 = vector.load %arg1[%c0, %c0_0, %c0_1] : memref<1x16x32xf32, #tpu.memory_space<vmem>>, vector<1x16x32xf32>
    %1 = vector.shape_cast %0 : vector<1x16x32xf32> to vector<16x32xf32>
    %2 = arith.truncf %1 : vector<16x32xf32> to vector<16x32xbf16>
    %c0_2 = arith.constant 0 : index
    %c0_3 = arith.constant 0 : index
    %3 = vector.load %arg3[%c0_2, %c0_3] : memref<32x96xbf16, #tpu.memory_space<vmem>>, vector<32x96xbf16>
    %cst = arith.constant dense<0.000000e+00> : vector<16x96xf32>
    %4 = tpu.matmul %2, %3, %cst {dimension_numbers = #tpu.dot_dimension_numbers<[1], [0], [0], [1], [0, 0, 1, 1], [], []>} : vector<16x32xbf16>, vector<32x96xbf16>, vector<16x96xf32> -> vector<16x96xf32>
    %c0_4 = arith.constant 0 : index
    %c0_5 = arith.constant 0 : index
    %5 = vector.load %arg2[%c0_4, %c0_5] : memref<16x32xf32, #tpu.memory_space<vmem>>, vector<16x32xf32>
    %6 = arith.truncf %5 : vector<16x32xf32> to vector<16x32xbf16>
    %c0_6 = arith.constant 0 : index
    %c0_7 = arith.constant 0 : index
    %7 = vector.load %arg4[%c0_6, %c0_7] : memref<32x32xbf16, #tpu.memory_space<vmem>>, vector<32x32xbf16>
    %cst_8 = arith.constant dense<0.000000e+00> : vector<16x32xf32>
    %8 = tpu.matmul %6, %7, %cst_8 {dimension_numbers = #tpu.dot_dimension_numbers<[1], [0], [0], [1], [0, 0, 1, 1], [], []>} : vector<16x32xbf16>, vector<32x32xbf16>, vector<16x32xf32> -> vector<16x32xf32>
    %9 = vector.extract_strided_slice %4 {offsets = [8, 0], sizes = [8, 32], strides = [1, 1]} : vector<16x96xf32> to vector<8x32xf32>
    %10 = vector.extract_strided_slice %4 {offsets = [0, 32], sizes = [16, 32], strides = [1, 1]} : vector<16x96xf32> to vector<16x32xf32>
    %11 = arith.truncf %10 : vector<16x32xf32> to vector<16x32xbf16>
    %12 = vector.extract_strided_slice %4 {offsets = [0, 64], sizes = [16, 32], strides = [1, 1]} : vector<16x96xf32> to vector<16x32xf32>
    %13 = arith.truncf %12 : vector<16x32xf32> to vector<16x32xbf16>
    %14 = arith.truncf %8 : vector<16x32xf32> to vector<16x32xbf16>
    %c0_9 = arith.constant 0 : index
    %c0_10 = arith.constant 0 : index
    %15 = vector.load %arg5[%c0_9, %c0_10] : memref<1x32xf32, #tpu.memory_space<vmem>>, vector<1x32xf32>
    %16 = vector.broadcast %15 : vector<1x32xf32> to vector<8x32xf32>
    %17 = arith.addf %9, %16 : vector<8x32xf32>
    %18 = arith.truncf %17 : vector<8x32xf32> to vector<8x32xbf16>
    %c0_11 = arith.constant 0 : index
    %c0_12 = arith.constant 0 : index
    %19 = vector.load %arg6[%c0_11, %c0_12] : memref<1x32xf32, #tpu.memory_space<vmem>>, vector<1x32xf32>
    %20 = vector.broadcast %19 : vector<1x32xf32> to vector<8x32xf32>
    %21 = arith.addf %9, %20 : vector<8x32xf32>
    %22 = arith.truncf %21 : vector<8x32xf32> to vector<8x32xbf16>
    %c0_13 = arith.constant 0 : index
    %c0_14 = arith.constant 0 : index
    %23 = vector.load %arg7[%c0_13, %c0_14] : memref<8x16xf32, #tpu.memory_space<vmem>>, vector<8x16xf32>
    %cst_15 = arith.constant 0.000000e+00 : f32
    %24 = vector.broadcast %cst_15 : f32 to vector<8x24xf32>
    %c0_16 = arith.constant 0 : index
    %c0_17 = arith.constant 0 : index
    %25 = vector.load %arg16[%c0_16, %c0_17] : memref<8x24xf32, #tpu.memory_space<vmem>>, vector<8x24xf32>
    tpu.vector_store %arg16[%c0_16, %c0_17], %24 {strides = array<i32>} : memref<8x24xf32, #tpu.memory_space<vmem>>, vector<8x24xf32>,
    %26 = vector.extract_strided_slice %18 {offsets = [0, 0], sizes = [8, 16], strides = [1, 1]} : vector<8x32xbf16> to vector<8x16xbf16>
    %27 = vector.extract_strided_slice %11 {offsets = [0, 0], sizes = [16, 16], strides = [1, 1]} : vector<16x32xbf16> to vector<16x16xbf16>
    %cst_18 = arith.constant dense<0.000000e+00> : vector<8x16xf32>
    %28 = tpu.matmul %26, %27, %cst_18 {dimension_numbers = #tpu.dot_dimension_numbers<[1], [1], [0], [0], [0, 0, 1, 0], [], []>} : vector<8x16xbf16>, vector<16x16xbf16>, vector<8x16xf32> -> vector<8x16xf32>
    %29 = vector.extract_strided_slice %22 {offsets = [0, 0], sizes = [8, 16], strides = [1, 1]} : vector<8x32xbf16> to vector<8x16xbf16>
    %30 = vector.extract_strided_slice %14 {offsets = [0, 0], sizes = [16, 16], strides = [1, 1]} : vector<16x32xbf16> to vector<16x16xbf16>
    %cst_19 = arith.constant dense<0.000000e+00> : vector<8x16xf32>
    %31 = tpu.matmul %29, %30, %cst_19 {dimension_numbers = #tpu.dot_dimension_numbers<[1], [1], [0], [0], [0, 0, 1, 0], [], []>} : vector<8x16xbf16>, vector<16x16xbf16>, vector<8x16xf32> -> vector<8x16xf32>
    %c0_20 = arith.constant 0 : index
    %c0_21 = arith.constant 0 : index
    %32 = vector.load %arg16[%c0_20, %c0_21] : memref<8x24xf32, #tpu.memory_space<vmem>>, vector<8x16xf32>
    tpu.vector_store %arg16[%c0_20, %c0_21], %31 {strides = array<i32>} : memref<8x24xf32, #tpu.memory_space<vmem>>, vector<8x16xf32>,
    %c0_22 = arith.constant 0 : index
    %c7 = arith.constant 7 : index
    %33 = vector.load %arg16[%c0_22, %c7] : memref<8x24xf32, #tpu.memory_space<vmem>>, vector<1x16xf32>
    %c1 = arith.constant 1 : index
    %c6 = arith.constant 6 : index
    %34 = vector.load %arg16[%c1, %c6] : memref<8x24xf32, #tpu.memory_space<vmem>>, vector<1x16xf32>
    %c2 = arith.constant 2 : index
    %c5 = arith.constant 5 : index
    %35 = vector.load %arg16[%c2, %c5] : memref<8x24xf32, #tpu.memory_space<vmem>>, vector<1x16xf32>
    %c3 = arith.constant 3 : index
    %c4 = arith.constant 4 : index
    %36 = vector.load %arg16[%c3, %c4] : memref<8x24xf32, #tpu.memory_space<vmem>>, vector<1x16xf32>
    %c4_23 = arith.constant 4 : index
    %c3_24 = arith.constant 3 : index
    %37 = vector.load %arg16[%c4_23, %c3_24] : memref<8x24xf32, #tpu.memory_space<vmem>>, vector<1x16xf32>
    %c5_25 = arith.constant 5 : index
    %c2_26 = arith.constant 2 : index
    %38 = vector.load %arg16[%c5_25, %c2_26] : memref<8x24xf32, #tpu.memory_space<vmem>>, vector<1x16xf32>
    %c6_27 = arith.constant 6 : index
    %c1_28 = arith.constant 1 : index
    %39 = vector.load %arg16[%c6_27, %c1_28] : memref<8x24xf32, #tpu.memory_space<vmem>>, vector<1x16xf32>
    %c7_29 = arith.constant 7 : index
    %c0_30 = arith.constant 0 : index
    %40 = vector.load %arg16[%c7_29, %c0_30] : memref<8x24xf32, #tpu.memory_space<vmem>>, vector<1x16xf32>
    %41 = tpu.concatenate %33, %34, %35, %36, %37, %38, %39, %40 in 0 : vector<1x16xf32>, vector<1x16xf32>, vector<1x16xf32>, vector<1x16xf32>, vector<1x16xf32>, vector<1x16xf32>, vector<1x16xf32>, vector<1x16xf32> -> vector<8x16xf32>
    %42 = arith.addf %28, %41 : vector<8x16xf32>
    %cst_31 = arith.constant 2.500000e-01 : f32
    %43 = vector.broadcast %cst_31 : f32 to vector<8x16xf32>
    %44 = arith.mulf %42, %43 : vector<8x16xf32>
    %45 = arith.addf %44, %23 : vector<8x16xf32>
    %cst_32 = arith.constant dense<0xFF800000> : vector<8xf32>
    %46 = vector.multi_reduction <maximumf>, %45, %cst_32 [1] : vector<8x16xf32> to vector<8xf32>
    %47 = vector.shape_cast %46 : vector<8xf32> to vector<8x1xf32>
    %48 = vector.broadcast %47 : vector<8x1xf32> to vector<8x16xf32>
    %49 = arith.subf %45, %48 : vector<8x16xf32>
    %50 = math.exp %49 : vector<8x16xf32>
    %cst_33 = arith.constant dense<0.000000e+00> : vector<8xf32>
    %51 = vector.multi_reduction <add>, %50, %cst_33 [1] : vector<8x16xf32> to vector<8xf32>
    %52 = vector.shape_cast %51 : vector<8xf32> to vector<8x1xf32>
    %53 = tpu.reciprocal %52 {approx = true} : vector<8x1xf32> -> vector<8x1xf32>
    %54 = vector.broadcast %53 : vector<8x1xf32> to vector<8x16xf32>
    %55 = arith.mulf %50, %54 : vector<8x16xf32>
    %56 = arith.truncf %55 : vector<8x16xf32> to vector<8x16xbf16>
    %57 = vector.extract_strided_slice %13 {offsets = [0, 0], sizes = [16, 16], strides = [1, 1]} : vector<16x32xbf16> to vector<16x16xbf16>
    %cst_34 = arith.constant dense<0.000000e+00> : vector<8x16xf32>
    %58 = tpu.matmul %56, %57, %cst_34 {dimension_numbers = #tpu.dot_dimension_numbers<[1], [0], [0], [1], [0, 0, 1, 1], [], []>} : vector<8x16xbf16>, vector<16x16xbf16>, vector<8x16xf32> -> vector<8x16xf32>
    %59 = vector.extract_strided_slice %18 {offsets = [0, 16], sizes = [8, 16], strides = [1, 1]} : vector<8x32xbf16> to vector<8x16xbf16>
    %60 = vector.extract_strided_slice %11 {offsets = [0, 16], sizes = [16, 16], strides = [1, 1]} : vector<16x32xbf16> to vector<16x16xbf16>
    %cst_35 = arith.constant dense<0.000000e+00> : vector<8x16xf32>
    %61 = tpu.matmul %59, %60, %cst_35 {dimension_numbers = #tpu.dot_dimension_numbers<[1], [1], [0], [0], [0, 0, 1, 0], [], []>} : vector<8x16xbf16>, vector<16x16xbf16>, vector<8x16xf32> -> vector<8x16xf32>
    %62 = vector.extract_strided_slice %22 {offsets = [0, 16], sizes = [8, 16], strides = [1, 1]} : vector<8x32xbf16> to vector<8x16xbf16>
    %63 = vector.extract_strided_slice %14 {offsets = [0, 16], sizes = [16, 16], strides = [1, 1]} : vector<16x32xbf16> to vector<16x16xbf16>
    %cst_36 = arith.constant dense<0.000000e+00> : vector<8x16xf32>
    %64 = tpu.matmul %62, %63, %cst_36 {dimension_numbers = #tpu.dot_dimension_numbers<[1], [1], [0], [0], [0, 0, 1, 0], [], []>} : vector<8x16xbf16>, vector<16x16xbf16>, vector<8x16xf32> -> vector<8x16xf32>
    %c0_37 = arith.constant 0 : index
    %c0_38 = arith.constant 0 : index
    %65 = vector.load %arg16[%c0_37, %c0_38] : memref<8x24xf32, #tpu.memory_space<vmem>>, vector<8x16xf32>
    tpu.vector_store %arg16[%c0_37, %c0_38], %64 {strides = array<i32>} : memref<8x24xf32, #tpu.memory_space<vmem>>, vector<8x16xf32>,
    %c0_39 = arith.constant 0 : index
    %c7_40 = arith.constant 7 : index
    %66 = vector.load %arg16[%c0_39, %c7_40] : memref<8x24xf32, #tpu.memory_space<vmem>>, vector<1x16xf32>
    %c1_41 = arith.constant 1 : index
    %c6_42 = arith.constant 6 : index
    %67 = vector.load %arg16[%c1_41, %c6_42] : memref<8x24xf32, #tpu.memory_space<vmem>>, vector<1x16xf32>
    %c2_43 = arith.constant 2 : index
    %c5_44 = arith.constant 5 : index
    %68 = vector.load %arg16[%c2_43, %c5_44] : memref<8x24xf32, #tpu.memory_space<vmem>>, vector<1x16xf32>
    %c3_45 = arith.constant 3 : index
    %c4_46 = arith.constant 4 : index
    %69 = vector.load %arg16[%c3_45, %c4_46] : memref<8x24xf32, #tpu.memory_space<vmem>>, vector<1x16xf32>
    %c4_47 = arith.constant 4 : index
    %c3_48 = arith.constant 3 : index
    %70 = vector.load %arg16[%c4_47, %c3_48] : memref<8x24xf32, #tpu.memory_space<vmem>>, vector<1x16xf32>
    %c5_49 = arith.constant 5 : index
    %c2_50 = arith.constant 2 : index
    %71 = vector.load %arg16[%c5_49, %c2_50] : memref<8x24xf32, #tpu.memory_space<vmem>>, vector<1x16xf32>
    %c6_51 = arith.constant 6 : index
    %c1_52 = arith.constant 1 : index
    %72 = vector.load %arg16[%c6_51, %c1_52] : memref<8x24xf32, #tpu.memory_space<vmem>>, vector<1x16xf32>
    %c7_53 = arith.constant 7 : index
    %c0_54 = arith.constant 0 : index
    %73 = vector.load %arg16[%c7_53, %c0_54] : memref<8x24xf32, #tpu.memory_space<vmem>>, vector<1x16xf32>
    %74 = tpu.concatenate %66, %67, %68, %69, %70, %71, %72, %73 in 0 : vector<1x16xf32>, vector<1x16xf32>, vector<1x16xf32>, vector<1x16xf32>, vector<1x16xf32>, vector<1x16xf32>, vector<1x16xf32>, vector<1x16xf32> -> vector<8x16xf32>
    %75 = arith.addf %61, %74 : vector<8x16xf32>
    %cst_55 = arith.constant 2.500000e-01 : f32
    %76 = vector.broadcast %cst_55 : f32 to vector<8x16xf32>
    %77 = arith.mulf %75, %76 : vector<8x16xf32>
    %78 = arith.addf %77, %23 : vector<8x16xf32>
    %cst_56 = arith.constant dense<0xFF800000> : vector<8xf32>
    %79 = vector.multi_reduction <maximumf>, %78, %cst_56 [1] : vector<8x16xf32> to vector<8xf32>
    %80 = vector.shape_cast %79 : vector<8xf32> to vector<8x1xf32>
    %81 = vector.broadcast %80 : vector<8x1xf32> to vector<8x16xf32>
    %82 = arith.subf %78, %81 : vector<8x16xf32>
    %83 = math.exp %82 : vector<8x16xf32>
    %cst_57 = arith.constant dense<0.000000e+00> : vector<8xf32>
    %84 = vector.multi_reduction <add>, %83, %cst_57 [1] : vector<8x16xf32> to vector<8xf32>
    %85 = vector.shape_cast %84 : vector<8xf32> to vector<8x1xf32>
    %86 = tpu.reciprocal %85 {approx = true} : vector<8x1xf32> -> vector<8x1xf32>
    %87 = vector.broadcast %86 : vector<8x1xf32> to vector<8x16xf32>
    %88 = arith.mulf %83, %87 : vector<8x16xf32>
    %89 = arith.truncf %88 : vector<8x16xf32> to vector<8x16xbf16>
    %90 = vector.extract_strided_slice %13 {offsets = [0, 16], sizes = [16, 16], strides = [1, 1]} : vector<16x32xbf16> to vector<16x16xbf16>
    %cst_58 = arith.constant dense<0.000000e+00> : vector<8x16xf32>
    %91 = tpu.matmul %89, %90, %cst_58 {dimension_numbers = #tpu.dot_dimension_numbers<[1], [0], [0], [1], [0, 0, 1, 1], [], []>} : vector<8x16xbf16>, vector<16x16xbf16>, vector<8x16xf32> -> vector<8x16xf32>
    %92 = tpu.concatenate %58, %91 in 1 : vector<8x16xf32>, vector<8x16xf32> -> vector<8x32xf32>
    %93 = arith.truncf %92 : vector<8x32xf32> to vector<8x32xbf16>
    %c0_59 = arith.constant 0 : index
    %c0_60 = arith.constant 0 : index
    %94 = vector.load %arg8[%c0_59, %c0_60] : memref<32x32xbf16, #tpu.memory_space<vmem>>, vector<32x32xbf16>
    %cst_61 = arith.constant dense<0.000000e+00> : vector<8x32xf32>
    %95 = tpu.matmul %93, %94, %cst_61 {dimension_numbers = #tpu.dot_dimension_numbers<[1], [0], [0], [1], [0, 0, 1, 1], [], []>} : vector<8x32xbf16>, vector<32x32xbf16>, vector<8x32xf32> -> vector<8x32xf32>
    %96 = vector.extract_strided_slice %1 {offsets = [8, 0], sizes = [8, 32], strides = [1, 1]} : vector<16x32xf32> to vector<8x32xf32>
    %97 = arith.addf %96, %95 : vector<8x32xf32>
    %cst_62 = arith.constant dense<0.000000e+00> : vector<8xf32>
    %98 = vector.multi_reduction <add>, %97, %cst_62 [1] : vector<8x32xf32> to vector<8xf32>
    %99 = vector.shape_cast %98 : vector<8xf32> to vector<8x1xf32>
    %cst_63 = arith.constant 3.200000e+01 : f32
    %100 = vector.broadcast %cst_63 : f32 to vector<8x1xf32>
    %101 = arith.divf %99, %100 : vector<8x1xf32>
    %102 = vector.broadcast %101 : vector<8x1xf32> to vector<8x32xf32>
    %103 = arith.subf %97, %102 : vector<8x32xf32>
    %104 = arith.mulf %103, %103 : vector<8x32xf32>
    %cst_64 = arith.constant dense<0.000000e+00> : vector<8xf32>
    %105 = vector.multi_reduction <add>, %104, %cst_64 [1] : vector<8x32xf32> to vector<8xf32>
    %106 = vector.shape_cast %105 : vector<8xf32> to vector<8x1xf32>
    %cst_65 = arith.constant 3.200000e+01 : f32
    %107 = vector.broadcast %cst_65 : f32 to vector<8x1xf32>
    %108 = arith.divf %106, %107 : vector<8x1xf32>
    %109 = vector.broadcast %101 : vector<8x1xf32> to vector<8x32xf32>
    %110 = arith.subf %97, %109 : vector<8x32xf32>
    %cst_66 = arith.constant 9.99999974E-6 : f32
    %111 = vector.broadcast %cst_66 : f32 to vector<8x1xf32>
    %112 = arith.addf %108, %111 : vector<8x1xf32>
    %113 = math.rsqrt %112 : vector<8x1xf32>
    %114 = vector.broadcast %113 : vector<8x1xf32> to vector<8x32xf32>
    %115 = arith.mulf %110, %114 : vector<8x32xf32>
    %c0_67 = arith.constant 0 : index
    %c0_68 = arith.constant 0 : index
    %116 = vector.load %arg9[%c0_67, %c0_68] : memref<1x32xf32, #tpu.memory_space<vmem>>, vector<1x32xf32>
    %117 = vector.broadcast %116 : vector<1x32xf32> to vector<8x32xf32>
    %118 = arith.mulf %115, %117 : vector<8x32xf32>
    %c0_69 = arith.constant 0 : index
    %c0_70 = arith.constant 0 : index
    %119 = vector.load %arg10[%c0_69, %c0_70] : memref<1x32xf32, #tpu.memory_space<vmem>>, vector<1x32xf32>
    %120 = vector.broadcast %119 : vector<1x32xf32> to vector<8x32xf32>
    %121 = arith.addf %118, %120 : vector<8x32xf32>
    %122 = arith.truncf %121 : vector<8x32xf32> to vector<8x32xbf16>
    %c0_71 = arith.constant 0 : index
    %c0_72 = arith.constant 0 : index
    %123 = vector.load %arg11[%c0_71, %c0_72] : memref<32x64xbf16, #tpu.memory_space<vmem>>, vector<32x64xbf16>
    %cst_73 = arith.constant dense<0.000000e+00> : vector<8x64xf32>
    %124 = tpu.matmul %122, %123, %cst_73 {dimension_numbers = #tpu.dot_dimension_numbers<[1], [0], [0], [1], [0, 0, 1, 1], [], []>} : vector<8x32xbf16>, vector<32x64xbf16>, vector<8x64xf32> -> vector<8x64xf32>
    %c0_74 = arith.constant 0 : index
    %c0_75 = arith.constant 0 : index
    %125 = vector.load %arg12[%c0_74, %c0_75] : memref<1x64xf32, #tpu.memory_space<vmem>>, vector<1x64xf32>
    %126 = vector.broadcast %125 : vector<1x64xf32> to vector<8x64xf32>
    %127 = arith.addf %124, %126 : vector<8x64xf32>
    %cst_76 = arith.constant 0.000000e+00 : f32
    %128 = vector.broadcast %cst_76 : f32 to vector<8x64xf32>
    %129 = arith.maximumf %127, %128 : vector<8x64xf32>
    %130 = arith.truncf %129 : vector<8x64xf32> to vector<8x64xbf16>
    %c0_77 = arith.constant 0 : index
    %c0_78 = arith.constant 0 : index
    %131 = vector.load %arg13[%c0_77, %c0_78] : memref<64x32xbf16, #tpu.memory_space<vmem>>, vector<64x32xbf16>
    %cst_79 = arith.constant dense<0.000000e+00> : vector<8x32xf32>
    %132 = tpu.matmul %130, %131, %cst_79 {dimension_numbers = #tpu.dot_dimension_numbers<[1], [0], [0], [1], [0, 0, 1, 1], [], []>} : vector<8x64xbf16>, vector<64x32xbf16>, vector<8x32xf32> -> vector<8x32xf32>
    %c0_80 = arith.constant 0 : index
    %c0_81 = arith.constant 0 : index
    %133 = vector.load %arg14[%c0_80, %c0_81] : memref<1x32xf32, #tpu.memory_space<vmem>>, vector<1x32xf32>
    %134 = vector.broadcast %133 : vector<1x32xf32> to vector<8x32xf32>
    %135 = arith.addf %132, %134 : vector<8x32xf32>
    %c0_82 = arith.constant 0 : index
    %c0_83 = arith.constant 0 : index
    %c0_84 = arith.constant 0 : index
    %136 = vector.load %arg15[%c0_82, %c0_83, %c0_84] : memref<1x8x32xf32, #tpu.memory_space<vmem>>, vector<1x8x32xf32>
    %137 = vector.shape_cast %136 : vector<1x8x32xf32> to vector<8x32xf32>
    %138 = vector.shape_cast %135 : vector<8x32xf32> to vector<1x8x32xf32>
    tpu.vector_store %arg15[%c0_82, %c0_83, %c0_84], %138 {strides = array<i32>} : memref<1x8x32xf32, #tpu.memory_space<vmem>>, vector<1x8x32xf32>,
    return
  }
  func.func @transform_0(%arg0: i32) -> (i32, i32, i32) {
    %c0_i32 = arith.constant 0 : i32
    %c0_i32_0 = arith.constant 0 : i32
    %c0_i32_1 = arith.constant 0 : i32
    return %arg0, %c0_i32, %c0_i32_0 : i32, i32, i32
  }
  func.func @transform_1(%arg0: i32) -> (i32, i32) {
    %c0_i32 = arith.constant 0 : i32
    %c0_i32_0 = arith.constant 0 : i32
    %c0_i32_1 = arith.constant 0 : i32
    return %c0_i32, %c0_i32_0 : i32, i32
  }
  func.func @transform_2(%arg0: i32) -> (i32, i32) {
    %c0_i32 = arith.constant 0 : i32
    %c0_i32_0 = arith.constant 0 : i32
    %c0_i32_1 = arith.constant 0 : i32
    return %c0_i32, %c0_i32_0 : i32, i32
  }
  func.func @transform_3(%arg0: i32) -> (i32, i32) {
    %c0_i32 = arith.constant 0 : i32
    %c0_i32_0 = arith.constant 0 : i32
    %c0_i32_1 = arith.constant 0 : i32
    return %c0_i32, %c0_i32_0 : i32, i32
  }
  func.func @transform_4(%arg0: i32) -> (i32, i32) {
    %c0_i32 = arith.constant 0 : i32
    %c0_i32_0 = arith.constant 0 : i32
    %c0_i32_1 = arith.constant 0 : i32
    return %c0_i32, %c0_i32_0 : i32, i32
  }
  func.func @transform_5(%arg0: i32) -> (i32, i32) {
    %c0_i32 = arith.constant 0 : i32
    %c0_i32_0 = arith.constant 0 : i32
    %c0_i32_1 = arith.constant 0 : i32
    return %c0_i32, %c0_i32_0 : i32, i32
  }
  func.func @transform_6(%arg0: i32) -> (i32, i32) {
    %c0_i32 = arith.constant 0 : i32
    %c0_i32_0 = arith.constant 0 : i32
    %c0_i32_1 = arith.constant 0 : i32
    return %c0_i32, %c0_i32_0 : i32, i32
  }
  func.func @transform_7(%arg0: i32) -> (i32, i32) {
    %c0_i32 = arith.constant 0 : i32
    %c0_i32_0 = arith.constant 0 : i32
    %c0_i32_1 = arith.constant 0 : i32
    return %c0_i32, %c0_i32_0 : i32, i32
  }
  func.func @transform_8(%arg0: i32) -> (i32, i32) {
    %c0_i32 = arith.constant 0 : i32
    %c0_i32_0 = arith.constant 0 : i32
    %c0_i32_1 = arith.constant 0 : i32
    return %c0_i32, %c0_i32_0 : i32, i32
  }
  func.func @transform_9(%arg0: i32) -> (i32, i32) {
    %c0_i32 = arith.constant 0 : i32
    %c0_i32_0 = arith.constant 0 : i32
    %c0_i32_1 = arith.constant 0 : i32
    return %c0_i32, %c0_i32_0 : i32, i32
  }
  func.func @transform_10(%arg0: i32) -> (i32, i32) {
    %c0_i32 = arith.constant 0 : i32
    %c0_i32_0 = arith.constant 0 : i32
    %c0_i32_1 = arith.constant 0 : i32
    return %c0_i32, %c0_i32_0 : i32, i32
  }
  func.func @transform_11(%arg0: i32) -> (i32, i32) {
    %c0_i32 = arith.constant 0 : i32
    %c0_i32_0 = arith.constant 0 : i32
    %c0_i32_1 = arith.constant 0 : i32
    return %c0_i32, %c0_i32_0 : i32, i32
  }
  func.func @transform_12(%arg0: i32) -> (i32, i32) {
    %c0_i32 = arith.constant 0 : i32
    %c0_i32_0 = arith.constant 0 : i32
    %c0_i32_1 = arith.constant 0 : i32
    return %c0_i32, %c0_i32_0 : i32, i32
  }
  func.func @transform_13(%arg0: i32) -> (i32, i32) {
    %c0_i32 = arith.constant 0 : i32
    %c0_i32_0 = arith.constant 0 : i32
    %c0_i32_1 = arith.constant 0 : i32
    return %c0_i32, %c0_i32_0 : i32, i32
  }
  func.func @transform_14(%arg0: i32) -> (i32, i32, i32) {
    %c0_i32 = arith.constant 0 : i32
    %c0_i32_0 = arith.constant 0 : i32
    %c0_i32_1 = arith.constant 0 : i32
    return %arg0, %c0_i32, %c0_i32_0 : i32, i32, i32
  }
}

</mosaic_0001>

<bundles_post_ra>
// kernel: xl_encoder_layer_forward.1
= control target key start
LH: loop header
LB: loop body
LE: loop exit
PB: predicated region body
PF: predicated region fallthrough
CT: control target
= control target key end

     0   :  { %19 = vsyncpa [#allocation4], 0  ;;  %s2281_s0 = inlined_call_operand.vmem [shape: f32[2,16,32], index: 0, kind: input, shape index: {}]   ;;  %s2282_s1 = inlined_call_operand.vmem [shape: f32[16,32], index: 1, kind: input, shape index: {}]   ;;  %s2283_s2 = inlined_call_operand.vmem [shape: bf16[32,96], index: 2, kind: input, shape index: {}]   ;;  %s2284_s3 = inlined_call_operand.vmem [shape: bf16[32,32], index: 3, kind: input, shape index: {}]   ;;  %s2285_s4 = inlined_call_operand.vmem [shape: f32[1,32], index: 4, kind: input, shape index: {}]   ;;  %s2286_s5 = inlined_call_operand.vmem [shape: f32[1,32], index: 5, kind: input, shape index: {}]   ;;  %s2287_s6 = inlined_call_operand.vmem [shape: f32[8,16], index: 6, kind: input, shape index: {}]   ;;  %s2288_s7 = inlined_call_operand.vmem [shape: bf16[32,32], index: 7, kind: input, shape index: {}]   ;;  %s2289_s8 = inlined_call_operand.vmem [shape: f32[1,32], index: 8, kind: input, shape index: {}]   ;;  %s2290_s9 = inlined_call_operand.hbm [shape: f32[1,32], index: 9, kind: input, shape index: {}]   ;;  %s2291_s10 = inlined_call_operand.vmem [shape: bf16[32,64], index: 10, kind: input, shape index: {}]   ;;  %s2292_s11 = inlined_call_operand.hbm [shape: f32[1,64], index: 11, kind: input, shape index: {}]   ;;  %s2293_s12 = inlined_call_operand.vmem [shape: bf16[64,32], index: 12, kind: input, shape index: {}]   ;;  %s2294_s13 = inlined_call_operand.hbm [shape: f32[1,32], index: 13, kind: input, shape index: {}]   ;;  %s2295_s14 = inlined_call_operand.hbm [shape: f32[2,8,32], index: 14, kind: output, shape index: {}]  }
   0x1   :  { %20 = vsyncpa [#allocation7], 0 }
   0x2   :  { %21 = vsyncpa [#allocation5], 0 }
   0x3   :  { %23 = vsyncpa [#allocation5 + $0x1], 0  ;;  %s1951_s29 = smov 0   ;;  %s1953_s30 = smov 0  }
   0x4   :  { %s1955_s15 = smov 0   ;;  %s1957_s16 = smov 0  }
   0x5 LB: > { %2303 = sst [smem:[#allocation13_spill]] %s1850_s15  ;;  %s1972_s17 = sadd.s32 4294967295, %s1854_s16   ;;  %s1854_s16 = sphi %s1957_s16, %s2319_s16   ;;  %s1850_s15 = sphi %s1955_s15, %s2321_s15   ;;  %s1846_s30 = sphi %s1953_s30, %s2323_s30   ;;  %s1842_s29 = sphi %s1951_s29, %s2322_s29  }
   0x6   : > { %s1444_s18 = sadd.s32 4294967294, %s1854_s16   ;;  %s1976_s19 = sadd.s32 1, %s1854_s16  }
   0x7   : > { %2304 = sst [smem:[#allocation14_spill]] %s1976_s19  ;;  %s335_s20 = sadd.s32 1, %s1850_s15 }
   0x8   : > { %s332_s21 = ssub.s32 %s1854_s16, %s1976_s19  ;;  %p345_p0 = scmp.ne.s32.totalorder %s1850_s15, %s1846_s30 }
   0x9   : > { %p333_p1 = scmp.eq.s32.totalorder %s332_s21, 0  ;;  %p346_p2 = scmp.eq.s32.totalorder %s1972_s17, 1 }
   0xa   : > { %p351_p3 = scmp.ne.s32.totalorder %s1846_s30, %s1842_s29  ;;  %p352_p4 = scmp.eq.s32.totalorder %s1444_s18, 1 }
   0xb   : > { %s1987_s22 = scalar_select %p333_p1, %s1850_s15, %s335_s20  }
   0xc   : > { %p1989_p5 = por %p346_p2, %p345_p0  ;;  %p1993_p6 = por %p352_p4, %p351_p3 }
   0xd   : > { %2305 = sst [smem:[#allocation15_spill]] %s1987_s22  ;;  %p1445_p7 = scmp.ge.s32.totalorder %s1854_s16, 1 }
   0xe   : > { %s2306_s23 = scalar_select %p1989_p5, 1, 0 }
   0xf   : > { %s2307_s24 = scalar_select %p1993_p6, 1, 0 }
  0x10   : > { %p359_p8 = scmp.lt.s32.totalorder %s1854_s16, 3  ;;  %p2299_p9 = scmp.eq.s32.totalorder %s1972_s17, 0 }
  0x11   : > { %2308 = sst [smem:[#allocation16_spill]] %s2307_s24  ;;  %s1856_s26 = smov [#allocation6]  }
  0x12   : > { %p2000_p10 = pnand %p1445_p7, %p359_p8  ;;  %s410_s27 = sshll.u32 %s1856_s26, 4  ;;  %s411_s27 = int_to_ptr.vmem [resolvable:$true] %s410_s27 }
  0x13   : > { %s1857_s28 = smov [#allocation3]   ;;  %s1858_s21 = smov [#allocation8]  }
  0x14   : > { %p1614_p11 = pneg %p2000_p10  ;;  %s396_s18 = sshll.u32 %s1857_s28, 4  ;;  %s397_s18 = int_to_ptr.vmem [resolvable:$true] %s396_s18 }
  0x15   : > { %s424_s22 = sshll.u32 %s1858_s21, 4  ;;  %s1719_s26 = scalar_lea.vmem %s411_s27, 16  ;;  %s2012_s22 = int_to_ptr.vmem [resolvable:$true] %s424_s22 }
  0x16   : > { %p2008_p12 = pnand %p2299_p9, %p1614_p11  ;;  %p1720_p0 = scmp.ne.s32.totalorder %s411_s27, %s1719_s26 }
  0x17   : > { %s1726_s28 = scalar_lea.vmem %s411_s27, 32  ;;  %p1727_p3 = scmp.lt.s32.totalorder %s411_s27, %s411_s27 }
  0x18   : > { %p1710_p13 = pneg %p2008_p12  ;;  %p1728_p4 = scmp.lt.s32.totalorder %s1726_s28, %s1719_s26 }
  0x1a   : > { %p1722_p1 = pnand %p1720_p0, %p1710_p13  ;;  %p1729_p7 = por %p1728_p4, %p1727_p3 }
  0x1c   : > { %p1723_p2 = pneg %p1722_p1 }
  0x1e   : > { %p1730_p8 = pnand %p1729_p7, %p1723_p2 }
  0x20   : > { %1733 = shalt.err (!%p1730_p8)
}
  0x21   : > { %1620 = dma.hbm_to_vmem [thread:$0]  (!%p2008_p12), %s2292_s11, 16, %s411_s27, [#allocation7]  }
  0x22   : > { %s1745_s19 = scalar_lea.vmem %s397_s18, 16  ;;  %s1752_s24 = scalar_lea.vmem %s397_s18, 32 }
  0x23   : > { %p1746_p11 = scmp.ne.s32.totalorder %s397_s18, %s1745_s19  ;;  %p1753_p1 = scmp.lt.s32.totalorder %s397_s18, %s397_s18 }
  0x24   : > { %p1754_p6 = scmp.lt.s32.totalorder %s1752_s24, %s1745_s19 }
  0x25   : > { %p1748_p9 = pnand %p1746_p11, %p1710_p13 }
  0x26   : > { %p1755_p5 = por %p1754_p6, %p1753_p1 }
  0x27   : > { %p1749_p0 = pneg %p1748_p9 }
  0x29   : > { %p1756_p3 = pnand %p1755_p5, %p1749_p0 }
  0x2b   : > { %1759 = shalt.err (!%p1756_p3)
}
  0x2c   : > { %1617 = dma.hbm_to_vmem [thread:$0]  (!%p2008_p12), %s2290_s9, 16, %s397_s18, [#allocation4]  }
  0x2d   : > { %s1771_s15 = scalar_lea.vmem %s2012_s22, 16  ;;  %s1778_s19 = scalar_lea.vmem %s2012_s22, 32 }
  0x2e   : > { %p1772_p2 = scmp.ne.s32.totalorder %s2012_s22, %s1771_s15  ;;  %p1779_p5 = scmp.lt.s32.totalorder %s2012_s22, %s2012_s22 }
  0x2f   : > { %p1780_p6 = scmp.lt.s32.totalorder %s1778_s19, %s1771_s15 }
  0x30   : > { %p1774_p9 = pnand %p1772_p2, %p1710_p13 }
  0x31   : > { %p1781_p7 = por %p1780_p6, %p1779_p5 }
  0x32   : > { %p1775_p4 = pneg %p1774_p9 }
  0x34   : > { %p1782_p8 = pnand %p1781_p7, %p1775_p4 }
  0x36   : > { %1785 = shalt.err (!%p1782_p8)
}
  0x37   : > { %1623 = dma.hbm_to_vmem [thread:$0]  (!%p2008_p12), %s2294_s13, 16, %s2012_s22, [#allocation7]  }
  0x38   : > { %445 = sbr.rel (%p2000_p10) target bundleno = 2802 (0xaf2), region = 76  ;;  %p2311_p13 = scmp.eq.s32.totalorder (!%p2000_p10), %s1972_s17, 0 }
  0x3d   : > { %1829 = dma.done.wait (%p2311_p13), [#allocation4], 16   ;;  %p2312_p11 = pmov %p2311_p13 }
  0x3f   : > { %1831 = vsyncadd (%p2312_p11), [#allocation4], 4294967280  ;;  %p2313_p0 = pmov %p2312_p11 }
  0x41   : > { %1833 = dma.done.wait (%p2313_p0), [#allocation7], 32   ;;  %p2314_p1 = pmov %p2313_p0 }
  0x42   : > { %p499_p3 = scmp.lt.s32.totalorder %s1972_s17, 1  ;;  %v1859_v0 = vmov 0.0   ;;  %vm1860_vm0 = vmmov 0   ;;  %v1686_v1 = vld [vmem:[%s2283_s2 + $0x8] sm:$0xff]   ;;  %v1687_v2 = vld [vmem:[%s2283_s2] sm:$0xff]   ;;  %vm524_vm1 = vcmask 261120  }
  0x43   : > { %1835 = vsyncadd (%p2314_p1), [#allocation7], 4294967264  ;;  %1520 = vmatprep.subr.bf16.mxu1 %v1859_v0  ;;  %1524 = vmatprep.mubr.msk.bf16.mxu1 %vm1860_vm0, %v1859_v0  ;;  %v1688_v6 = vld [vmem:[%s2284_s3 + $0x8] sm:$0xff]   ;;  %v1689_v7 = vld [vmem:[%s2284_s3] sm:$0xff]   ;;  %vm653_vm2 = vcmask 195584   ;;  %s1861_s28 = smov 96  }
  0x44   : > { %s500_s22 = scalar_select %p499_p3, %s1972_s17, 1  ;;  %1536 = vmatprep.subr.bf16.mxu0 %v1859_v0  ;;  %1538 = vmatprep.mubr.msk.bf16.mxu0 %vm1860_vm0, %v1859_v0  ;;  %v569_v8 = vld [vmem:[%s2282_s1] sm:$0xff]  ;;  %v570_v9 = vld [vmem:[%s2282_s1 + $0x8] sm:$0xff]  ;;  %654 = vst.msk [vmem:[#allocation2] sm:$0xff] %vm653_vm2, %v1859_v0  ;;  %vm655_vm3 = vcmask 130048   ;;  %vm746_vm4 = vcmask 1040384  }
  0x45   : > { %1521 = vmatpush3.bf16.msra.mxu1 %v1686_v1  ;;  %v571_v10 = vpack.c.bf16 %v570_v9, %v569_v8  ;;  %v1464_v20 = vld [vmem:[%s2286_s5] ss:$0 sm:$0xff]  ;;  %s1864_s18 = smov 3   ;;  %s1865_s20 = smov 4   ;;  %vm748_vm5 = vcmask 1041408   ;;  %vm750_vm6 = vcmask 1042432  }
  0x46   : > { %s1490_s25 = sshll.u32 %s500_s22, 4  ;;  %1522 = vmatprep.subr.bf16.mxu1 %v1859_v0  ;;  %v1463_v25 = vld [vmem:[%s2285_s4] ss:$0 sm:$0xff]  ;;  %s1862_s22 = smov 2   ;;  %vm752_vm7 = vcmask 1043456   ;;  %vm754_vm8 = vcmask 1044480  }
  0x47   : > { %s503_s21 = scalar_lea.vmem %s2281_s0, %s1490_s25  ;;  %s1863_s25 = smov 1   ;;  %vm756_vm9 = vcmask 1045504   ;;  %vm758_vm10 = vcmask 1046528   ;;  %v2148_v9 = vld [vmem:[%s2287_s6] sm:$0xff]  ;;  %vm1295_vm11 = vcmask 523264  }
  0x48   : > { %v505_v3 = vld [vmem:[%s503_s21] sm:$0xff]  ;;  %v2073_v4 = vld [vmem:[%s503_s21 + $0x8] sm:$0xff]  ;;  %s1866_s21 = smov 5   ;;  %s1867_s26 = smov 6  }
  0x49   : > { %v507_v5 = vpack.c.bf16 %v2073_v4, %v505_v3  ;;  %1523 = vmatpush3.bf16.msra.mxu1 %v1687_v2  ;;  %s1869_s15 = smov 112   ;;  %s2302_s19 = smov 121  }
  0x4a   : > { %1528 = vmatprep.subr.bf16.mxu1 %v1859_v0  ;;  %s1872_s24 = smov 64   ;;  %p2316_p12 = scmp.ne.s32.totalorder %s2306_s23, 0 }
  0x4c   : > { %1525 = vmatmul.mubr.msk.bf16.vlgmr.msra.gmra.mxu1 %vm524_vm1, %v507_v5 }
  0x4d   : > { %1529 = vmatpush3.bf16.msra.mxu1 %v1688_v6  ;;  %1532 = vmatprep.mubr.msk.bf16.mxu1 %vm1860_vm0, %v1859_v0 }
  0x4e   : > { %1530 = vmatprep.subr.bf16.mxu1 %v1859_v0 }
  0x51   : > { %1531 = vmatpush3.bf16.msra.mxu1 %v1689_v7 }
  0x52   : > { %1542 = vmatprep.subr.bf16.mxu1 %v1859_v0 }
  0x54   : > { %1533 = vmatmul.mubr.msk.bf16.vlgmr.msra.gmra.mxu1 %vm524_vm1, %v571_v10 }
  0x55   : > { %1544 = vmatprep.mubr.msk.bf16.mxu1 %vm1860_vm0, %v1859_v0 }
 0x10c   : > { %v562_v11 = vpop.f32.mrf.mxu1 }
 0x10e   : > { %v1526_v12 = vpop.f32.mrf.mxu1 }
 0x110   : > { %v565_v13 = vpop.f32.mrf.mxu1 }
 0x111   : > { %v2099_v14 = vpack.c.bf16 %v565_v13, %v562_v11  ;;  %v650_v23 = vadd.f32 %v1464_v20, %v565_v13  ;;  %v641_v28 = vadd.f32 %v1463_v25, %v565_v13 }
 0x112   : > { %v1527_v15 = vpop.f32.mrf.mxu1 }
 0x113   : > { %761 = vrot.lane.b32.xlu0 %v2099_v14, %s1861_s28  ;;  %v2107_v24 = vpack.c.bf16 %v650_v23, %v650_v23  ;;  %v2118_v29 = vpack.c.bf16 %v641_v28, %v641_v28  ;;  %s1868_s28 = smov 7  }
 0x114   : > { %v625_v16 = vpop.f32.mrf.mxu1 }
 0x116   : > { %v1534_v17 = vpop.f32.mrf.mxu1 }
 0x118   : > { %v628_v18 = vpop.f32.mrf.mxu1 }
 0x119   : > { %v633_v19 = vpack.c.bf16 %v628_v18, %v625_v16 }
 0x11a   : > { %v1535_v21 = vpop.f32.mrf.mxu1 }
 0x11b   : > { %v660_v22 = vsel %vm655_vm3, %v633_v19, 0 }
 0x11c   : > { %1537 = vmatpush3.bf16.xpose.msra.mxu0 %v660_v22 }
 0x11d   : > { %1548 = vmatprep.subr.bf16.mxu0 %v1859_v0 }
 0x123   : > { %1539 = vmatmul.mubr.msk.bf16.vlgmr.msra.gmra.mxu0 %vm655_vm3, %v2107_v24 }
 0x124   : > { %1550 = vmatprep.mubr.msk.bf16.mxu0 %vm1860_vm0, %v1859_v0 }
 0x185   : > { %v762_v26 = vpop.permute.xlu0 %761 }
 0x186   : > { %v771_v27 = vsel %vm655_vm3, %v762_v26, 0 }
 0x187   : > { %1543 = vmatpush3.bf16.xpose.msra.mxu1 %v771_v27 }
 0x188   : > { %1554 = vmatprep.subr.bf16.mxu1 %v1859_v0 }
 0x18e   : > { %1545 = vmatmul.mubr.msk.bf16.vlgmr.msra.gmra.mxu1 %vm655_vm3, %v2118_v29 }
 0x18f   : > { %1556 = vmatprep.mubr.msk.bf16.mxu1 %vm1860_vm0, %v1859_v0 }
 0x1e3   : > { %v696_v30 = vpop.f32.mrf.mxu0 }
 0x1e4   : > { %702 = vst.msk [vmem:[#allocation2] sm:$0xff] %vm655_vm3, %v696_v30 }
 0x1e5   : > { %v1540_v31 = vpop.f32.mrf.mxu0 }
 0x1e7   : > { %v699_v32 = vpop.f32.mrf.mxu0 }
 0x1e9   : > { %v1541_v33 = vpop.f32.mrf.mxu0 }
 0x1eb   : > { %v705_v34 = vld [vmem:[#allocation2 + $0x2] sm:$0x1]  ;;  %v704_v35 = vld [vmem:[#allocation2 + $0x1] sm:$0x1]  ;;  %v706_v38 = vld [vmem:[#allocation2 + $0x3] sm:$0x1] }
 0x1ec   : > { %v717_v36 = vrot.slane %v705_v34, 6  ;;  %v712_v37 = vrot.slane %v704_v35, 7  ;;  %v707_v39 = vld [vmem:[#allocation2 + $0x4] sm:$0x1]  ;;  %v722_v40 = vrot.slane %v706_v38, 5 }
 0x1ed   : > { %v727_v41 = vrot.slane %v707_v39, 4  ;;  %v708_v42 = vld [vmem:[#allocation2 + $0x5] sm:$0x1]  ;;  %v709_v43 = vld [vmem:[#allocation2 + $0x6] sm:$0x1] }
 0x1ee   : > { %718 = vrot.lane.b32.xlu1 %v717_v36, %s1862_s22  ;;  %713 = vrot.lane.b32.xlu0 %v712_v37, %s1863_s25  ;;  %v732_v44 = vrot.slane %v708_v42, 3  ;;  %v737_v45 = vrot.slane %v709_v43, 2  ;;  %v710_v46 = vld [vmem:[#allocation2 + $0x7] sm:$0x1]  ;;  %v703_v54 = vld [vmem:[#allocation2] sm:$0x1] }
 0x1ef   : > { %v742_v47 = vrot.slane %v710_v46, 1 }
 0x1f2   : > { %723 = vrot.lane.b32.xlu1 %v722_v40, %s1864_s18  ;;  %728 = vrot.lane.b32.xlu0 %v727_v41, %s1865_s20 }
 0x1f6   : > { %733 = vrot.lane.b32.xlu1 %v732_v44, %s1866_s21  ;;  %738 = vrot.lane.b32.xlu0 %v737_v45, %s1867_s26 }
 0x1fa   : > { %743 = vrot.lane.b32.xlu1 %v742_v47, %s1868_s28 }
 0x1fe   : > { %877 = vrot.lane.b32.xlu1 %v633_v19, %s1869_s15 }
 0x24e   : > { %v807_v48 = vpop.f32.mrf.mxu1 }
 0x250   : > { %v1546_v49 = vpop.f32.mrf.mxu1 }
 0x252   : > { %v810_v50 = vpop.f32.mrf.mxu1 }
 0x254   : > { %v1547_v51 = vpop.f32.mrf.mxu1 }
 0x260   : > { %v719_v52 = vpop.permute.xlu1 %718  ;;  %v714_v53 = vpop.permute.xlu0 %713 }
 0x261   : > { %v747_v55 = vsel %vm746_vm4, %v703_v54, %v714_v53 }
 0x262   : > { %v749_v57 = vsel %vm748_vm5, %v747_v55, %v719_v52 }
 0x264   : > { %v724_v56 = vpop.permute.xlu1 %723  ;;  %v729_v58 = vpop.permute.xlu0 %728 }
 0x265   : > { %v751_v59 = vsel %vm750_vm6, %v749_v57, %v724_v56 }
 0x266   : > { %v753_v60 = vsel %vm752_vm7, %v751_v59, %v729_v58 }
 0x268   : > { %v734_v61 = vpop.permute.xlu1 %733  ;;  %v739_v63 = vpop.permute.xlu0 %738 }
 0x269   : > { %v755_v62 = vsel %vm754_vm8, %v753_v60, %v734_v61 }
 0x26a   : > { %v757_v1 = vsel %vm756_vm9, %v755_v62, %v739_v63 }
 0x26c   : > { %v744_v2 = vpop.permute.xlu1 %743 }
 0x26d   : > { %v759_v3 = vsel %vm758_vm10, %v757_v1, %v744_v2 }
 0x26e   : > { %764 = vrot.lane.b32.xlu0 %v759_v3, %s2302_s19  ;;  %s1871_s19 = smov 80  }
 0x270   : > { %v878_v5 = vpop.permute.xlu1 %877 }
 0x271   : > { %v883_v6 = vsel %vm655_vm3, %v878_v5, 0 }
 0x272   : > { %1555 = vmatpush3.bf16.xpose.msra.mxu1 %v883_v6  ;;  %874 = vrot.lane.b32.xlu0 %v2107_v24, %s1869_s15 }
 0x273   : > { %1566 = vmatprep.subr.bf16.mxu1 %v1859_v0 }
 0x2e0   : > { %v765_v7 = vpop.permute.xlu0 %764 }
 0x2e1   : > { %v808_v8 = vadd.f32 %v807_v48, %v765_v7 }
 0x2e3   : > { %v813_v10 = vmul.f32 0.25, %v808_v8 }
 0x2e4   : > { %v875_v11 = vpop.permute.xlu0 %874 }
 0x2e5   : > { %1557 = vmatmul.mubr.msk.bf16.vlgmr.msra.gmra.mxu1 %vm655_vm3, %v875_v11  ;;  %v814_v12 = vadd.f32 %v813_v10, %v2148_v9 }
 0x2e6   : > { %1568 = vmatprep.mubr.msk.bf16.mxu1 %vm1860_vm0, %v1859_v0 }
 0x2e7   : > { %v815_v13 = vsel %vm655_vm3, %v814_v12, -inf }
 0x2e8   : > { %816 = vmax.xlane.f32.xlu1 %v815_v13 }
 0x2f9   : > { %979 = vrot.lane.b32.xlu1 %v2099_v14, %s1871_s19  ;;  %s1875_s19 = smov [#allocation9]  }
 0x2fa   : > { %s1790_s27 = sshll.u32 %s1875_s19, 4  ;;  %s1791_s27 = int_to_ptr.vmem [resolvable:$false] %s1790_s27 }
 0x2fd   : > { %977 = vrot.lane.b32.xlu1 %v2118_v29, %s1869_s15 }
 0x371   : > { %v817_v15 = vpop.xlane.xlu1 %816 }
 0x372   : > { %v818_v16 = vsub.f32 %v814_v12, %v817_v15 }
 0x374   : > { %v819_v17 = vmul.f32 1.442695, %v818_v16 }
 0x375   : > { %v980_v40 = vpop.permute.xlu1 %979 }
 0x376   : > { %1698 = vpow2.f32 %v819_v17  ;;  %v989_v45 = vsel %vm655_vm3, %v980_v40, 0 }
 0x379   : > { %v978_v43 = vpop.permute.xlu1 %977 }
 0x383   : > { %v1699_v18 = vpop.eup %1698 }
 0x384   : > { %v821_v19 = vsel %vm655_vm3, %v1699_v18, 0.0 }
 0x385   : > { %822 = vadd.xlane.f32.xlu0 %v821_v19 }
 0x39b   : > { %827 = vrot.lane.b32.xlu0 %v2099_v14, %s1872_s24  ;;  %s496_s24 = sand.u32 1, %s1846_s30  }
 0x39c   : > { %s1341_s15 = scalar_lea.sflag [#allocation5], %s496_s24 }
 0x3a5   : > { %v919_v20 = vpop.f32.mrf.mxu1 }
 0x3a6   : > { %925 = vst.msk [vmem:[#allocation2] sm:$0xff] %vm655_vm3, %v919_v20 }
 0x3a7   : > { %v1558_v21 = vpop.f32.mrf.mxu1 }
 0x3a9   : > { %v922_v22 = vpop.f32.mrf.mxu1 }
 0x3ab   : > { %v1559_v23 = vpop.f32.mrf.mxu1 }
 0x3ac   : > { %v1691_v23 = vld [vmem:[%s2288_s7] sm:$0xff]  }
 0x3ad   : > { %v928_v24 = vld [vmem:[#allocation2 + $0x2] sm:$0x1]  ;;  %v927_v25 = vld [vmem:[#allocation2 + $0x1] sm:$0x1]  ;;  %v930_v28 = vld [vmem:[#allocation2 + $0x4] sm:$0x1] }
 0x3ae   : > { %v940_v26 = vrot.slane %v928_v24, 6  ;;  %v935_v27 = vrot.slane %v927_v25, 7  ;;  %v929_v29 = vld [vmem:[#allocation2 + $0x3] sm:$0x1]  ;;  %v950_v30 = vrot.slane %v930_v28, 4 }
 0x3af   : > { %v945_v31 = vrot.slane %v929_v29, 5  ;;  %v932_v32 = vld [vmem:[#allocation2 + $0x6] sm:$0x1]  ;;  %v931_v33 = vld [vmem:[#allocation2 + $0x5] sm:$0x1] }
 0x3b0   : > { %941 = vrot.lane.b32.xlu1 %v940_v26, %s1862_s22  ;;  %936 = vrot.lane.b32.xlu0 %v935_v27, %s1863_s25  ;;  %v960_v34 = vrot.slane %v932_v32, 2  ;;  %v955_v35 = vrot.slane %v931_v33, 3  ;;  %v933_v36 = vld [vmem:[#allocation2 + $0x7] sm:$0x1]  ;;  %v926_v48 = vld [vmem:[#allocation2] sm:$0x1] }
 0x3b1   : > { %v965_v37 = vrot.slane %v933_v36, 1  ;;  %s2315_s22 = smov 121   ;;  %s1873_s25 = smov 48  }
 0x3b4   : > { %951 = vrot.lane.b32.xlu1 %v950_v30, %s1865_s20  ;;  %946 = vrot.lane.b32.xlu0 %v945_v31, %s1864_s18 }
 0x3b8   : > { %961 = vrot.lane.b32.xlu1 %v960_v34, %s1867_s26  ;;  %956 = vrot.lane.b32.xlu0 %v955_v35, %s1866_s21 }
 0x3bc   : > { %966 = vrot.lane.b32.xlu0 %v965_v37, %s1868_s28  ;;  %s1874_s28 = smov 16  }
 0x40e   : > { %v823_v38 = vpop.xlane.xlu0 %822 }
 0x40f   : > { %1700 = vrcp.f32 %v823_v38 }
 0x412   : > { %v828_v39 = vpop.permute.xlu0 %827 }
 0x413   : > { %1549 = vmatpush3.bf16.msra.mxu0 %v828_v39 }
 0x414   : > { %1560 = vmatprep.subr.bf16.mxu0 %v1859_v0 }
 0x41c   : > { %v1701_v41 = vpop.eup %1700 }
 0x41d   : > { %v825_v42 = vmul.f32 %v1701_v41, %v1699_v18 }
 0x41f   : > { %v826_v44 = vpack.c.bf16 %v825_v42, %v825_v42  ;;  %v1692_v42 = vld [vmem:[%s2291_s10 + $0x8] sm:$0xff]  }
 0x421   : > { %1551 = vmatmul.mubr.msk.bf16.vlgmr.msra.gmra.mxu0 %vm655_vm3, %v826_v44  ;;  %v1695_v44 = vld [vmem:[%s2293_s12 + $0x10] sm:$0xff]  }
 0x422   : > { %1561 = vmatpush3.bf16.xpose.msra.mxu0 %v989_v45  ;;  %v942_v46 = vpop.permute.xlu1 %941  ;;  %v937_v47 = vpop.permute.xlu0 %936  ;;  %1562 = vmatprep.mubr.msk.bf16.mxu0 %vm1860_vm0, %v1859_v0 }
 0x423   : > { %v969_v49 = vsel %vm746_vm4, %v926_v48, %v937_v47  ;;  %1572 = vmatprep.subr.bf16.mxu0 %v1859_v0 }
 0x424   : > { %v970_v52 = vsel %vm748_vm5, %v969_v49, %v942_v46  ;;  %v1474_v49 = vld [vmem:[%s2289_s8] ss:$0 sm:$0xff] }
 0x426   : > { %v952_v50 = vpop.permute.xlu1 %951  ;;  %v947_v51 = vpop.permute.xlu0 %946 }
 0x427   : > { %v971_v53 = vsel %vm750_vm6, %v970_v52, %v947_v51  ;;  %v1475_v51 = vld [vmem:[#allocation3] ss:$0 sm:$0xff] }
 0x428   : > { %v972_v55 = vsel %vm752_vm7, %v971_v53, %v952_v50 }
 0x429   : > { %1563 = vmatmul.mubr.msk.bf16.vlgmr.msra.gmra.mxu0 %vm655_vm3, %v978_v43  ;;  %v1694_v43 = vld [vmem:[%s2293_s12 + $0x18] sm:$0xff]  }
 0x42a   : > { %v957_v54 = vpop.permute.xlu0 %956  ;;  %1576 = vmatprep.mubr.msk.bf16.mxu0 %vm1860_vm0, %v1859_v0  ;;  %v962_v56 = vpop.permute.xlu1 %961 }
 0x42b   : > { %v973_v57 = vsel %vm754_vm8, %v972_v55, %v957_v54  ;;  %v1696_v55 = vld [vmem:[%s2293_s12 + $0x8] sm:$0xff]  }
 0x42c   : > { %v974_v59 = vsel %vm756_vm9, %v973_v57, %v962_v56  ;;  %v1697_v56 = vld [vmem:[%s2293_s12] sm:$0xff]   ;;  %v1476_v57 = vld [vmem:[#allocation6] ss:$0 sm:$0xff] }
 0x42e   : > { %v967_v58 = vpop.permute.xlu0 %966 }
 0x42f   : > { %v975_v60 = vsel %vm758_vm10, %v974_v59, %v967_v58 }
 0x430   : > { %982 = vrot.lane.b32.xlu1 %v975_v60, %s2315_s22  ;;  %s1454_s22 = sshll.u32 %s496_s24, 3 }
 0x431   : > { %s498_s18 = scalar_lea.vmem [#allocation9], %s1454_s22  ;;  %s1792_s22 = scalar_lea.vmem %s1791_s27, 256 }
 0x432   : > { %s1354_s20 = sshll.u32 %s498_s18, 4  ;;  %s2241_s20 = int_to_ptr.vmem [resolvable:$true] %s1354_s20 }
 0x433   : > { %p1793_p4 = scmp.lt.s32.totalorder %s2241_s20, %s1791_s27 }
 0x4a2   : > { %v983_v2 = vpop.permute.xlu1 %982 }
 0x4e1   : > { %v867_v61 = vpop.f32.mrf.mxu0 }
 0x4e3   : > { %v1552_v62 = vpop.f32.mrf.mxu0 }
 0x4e5   : > { %v870_v63 = vpop.f32.mrf.mxu0 }
 0x4e7   : > { %v1553_v1 = vpop.f32.mrf.mxu0 }
 0x4e9   : > { %v1025_v3 = vpop.f32.mrf.mxu0 }
 0x4ea   : > { %v1026_v5 = vadd.f32 %v1025_v3, %v983_v2 }
 0x4eb   : > { %v1564_v6 = vpop.f32.mrf.mxu0 }
 0x4ec   : > { %v1031_v7 = vmul.f32 0.25, %v1026_v5 }
 0x4ed   : > { %v1028_v8 = vpop.f32.mrf.mxu0 }
 0x4ee   : > { %v1032_v10 = vadd.f32 %v1031_v7, %v2148_v9 }
 0x4ef   : > { %v1565_v11 = vpop.f32.mrf.mxu0 }
 0x4f0   : > { %v1033_v12 = vsel %vm655_vm3, %v1032_v10, -inf }
 0x4f1   : > { %1034 = vmax.xlane.f32.xlu0 %v1033_v12 }
 0x507   : > { %1045 = vrot.lane.b32.xlu0 %v2099_v14, %s1873_s25  ;;  %v1690_v14 = vld [vmem:[%s2288_s7 + $0x8] sm:$0xff]   ;;  %s1487_s25 = sshll.u32 %s1972_s17, 7  ;;  %s1786_s17 = scalar_lea.vmem %s2241_s20, 128 }
 0x508   : > { %1573 = vmatpush3.bf16.msra.mxu0 %v1690_v14  ;;  %p1787_p10 = scmp.ne.s32.totalorder %s2241_s20, %s1786_s17  ;;  %p1794_p5 = scmp.lt.s32.totalorder %s1792_s22, %s1786_s17 }
 0x509   : > { %1574 = vmatprep.subr.bf16.mxu0 %v1859_v0 }
 0x50a   : > { %p1788_p2 = pnand %p1787_p10, %p2316_p12  ;;  %p1795_p6 = por %p1794_p5, %p1793_p4 }
 0x50c   : > { %1575 = vmatpush3.bf16.msra.mxu0 %v1691_v23  ;;  %p1789_p9 = pneg %p1788_p2 }
 0x50d   : > { %1588 = vmatprep.subr.bf16.mxu0 %v1859_v0 }
 0x50e   : > { %p1796_p7 = pnand %p1795_p6, %p1789_p9 }
 0x57a   : > { %v1035_v13 = vpop.xlane.xlu0 %1034 }
 0x57b   : > { %v1036_v15 = vsub.f32 %v1032_v10, %v1035_v13 }
 0x57d   : > { %v1037_v16 = vmul.f32 1.442695, %v1036_v15 }
 0x57e   : > { %v1046_v17 = vpop.permute.xlu0 %1045 }
 0x57f   : > { %1702 = vpow2.f32 %v1037_v16  ;;  %1567 = vmatpush3.bf16.msra.mxu1 %v1046_v17 }
 0x580   : > { %1580 = vmatprep.subr.bf16.mxu1 %v1859_v0 }
 0x58c   : > { %v1703_v18 = vpop.eup %1702 }
 0x58d   : > { %v1039_v19 = vsel %vm655_vm3, %v1703_v18, 0.0 }
 0x58e   : > { %1040 = vadd.xlane.f32.xlu1 %v1039_v19 }
 0x617   : > { %v1041_v9 = vpop.xlane.xlu1 %1040 }
 0x618   : > { %1704 = vrcp.f32 %v1041_v9 }
 0x625   : > { %v1705_v20 = vpop.eup %1704 }
 0x626   : > { %v1043_v21 = vmul.f32 %v1705_v20, %v1703_v18 }
 0x628   : > { %v1044_v22 = vpack.c.bf16 %v1043_v21, %v1043_v21 }
 0x62a   : > { %1569 = vmatmul.mubr.msk.bf16.vlgmr.msra.gmra.mxu1 %vm655_vm3, %v1044_v22 }
 0x62b   : > { %1584 = vmatprep.mubr.msk.bf16.mxu1 %vm1860_vm0, %v1859_v0  ;;  %1581 = vmatpush3.bf16.msra.mxu1 %v1692_v42 }
 0x62c   : > { %1582 = vmatprep.subr.bf16.mxu1 %v1859_v0 }
 0x6ea   : > { %v1085_v24 = vpop.f32.mrf.mxu1 }
 0x6eb   : > { %1092 = vrot.lane.b32.xlu1 %v1085_v24, %s1874_s28  ;;  %s2239_s28 = scalar_lea.hbm %s2295_s14, %s1487_s25 }
 0x6ec   : > { %v1570_v25 = vpop.f32.mrf.mxu1 }
 0x6ee   : > { %v1088_v26 = vpop.f32.mrf.mxu1 }
 0x6f0   : > { %v1571_v27 = vpop.f32.mrf.mxu1 }
 0x75d   : > { %v1093_v28 = vpop.permute.xlu1 %1092 }
 0x75e   : > { %v1095_v29 = vsel %vm655_vm3, %v867_v61, %v1093_v28 }
 0x75f   : > { %v1096_v30 = vpack.c.bf16 %v1095_v29, %v1095_v29 }
 0x761   : > { %1577 = vmatmul.mubr.msk.bf16.vlgmr.msra.gmra.mxu0 %vm524_vm1, %v1096_v30 }
 0x762   : > { %1596 = vmatprep.mubr.msk.bf16.mxu0 %vm1860_vm0, %v1859_v0  ;;  %1589 = vmatpush3.bf16.msra.mxu0 %v1694_v43 }
 0x763   : > { %1590 = vmatprep.subr.bf16.mxu0 %v1859_v0 }
 0x766   : > { %1591 = vmatpush3.bf16.msra.mxu0 %v1695_v44 }
 0x767   : > { %1592 = vmatprep.subr.bf16.mxu0 %v1859_v0 }
 0x76a   : > { %1593 = vmatpush3.bf16.msra.mxu0 %v1696_v55 }
 0x76b   : > { %1594 = vmatprep.subr.bf16.mxu0 %v1859_v0  ;;  %v1480_v0 = vld [vmem:[#allocation8] ss:$0 sm:$0xff] }
 0x76e   : > { %1595 = vmatpush3.bf16.msra.mxu0 %v1697_v56 }
 0x821   : > { %v1150_v31 = vpop.f32.mrf.mxu0 }
 0x822   : > { %v1156_v32 = vadd.f32 %v1150_v31, %v2073_v4  ;;  %v1693_v4 = vld [vmem:[%s2291_s10] sm:$0xff]  }
 0x823   : > { %v1578_v33 = vpop.f32.mrf.mxu0  ;;  %1583 = vmatpush3.bf16.msra.mxu1 %v1693_v4 }
 0x824   : > { %v1157_v34 = vsel %vm524_vm1, %v1156_v32, 0.0 }
 0x825   : > { %1158 = vadd.xlane.f32.xlu0 %v1157_v34  ;;  %v1153_v35 = vpop.f32.mrf.mxu0 }
 0x827   : > { %v1579_v36 = vpop.f32.mrf.mxu0 }
 0x8ae   : > { %v1159_v37 = vpop.xlane.xlu0 %1158 }
 0x8af   : > { %v1161_v38 = vmul.f32 0.03125, %v1159_v37 }
 0x8b1   : > { %v1162_v39 = vsub.f32 %v1156_v32, %v1161_v38 }
 0x8b3   : > { %v1163_v40 = vmul.f32 %v1162_v39, %v1162_v39 }
 0x8b5   : > { %v1164_v41 = vsel %vm524_vm1, %v1163_v40, 0.0 }
 0x8b6   : > { %1165 = vadd.xlane.f32.xlu1 %v1164_v41 }
 0x93f   : > { %v1166_v45 = vpop.xlane.xlu1 %1165 }
 0x940   : > { %v1167_v46 = vmul.f32 0.03125, %v1166_v45 }
 0x942   : > { %v1168_v47 = vadd.f32 1e-05, %v1167_v46 }
 0x944   : > { %1706 = vrsqrt.f32 %v1168_v47 }
 0x951   : > { %v1707_v48 = vpop.eup %1706 }
 0x952   : > { %v1170_v50 = vmul.f32 %v1707_v48, %v1162_v39 }
 0x954   : > { %v1178_v52 = vmul.f32 %v1474_v49, %v1170_v50 }
 0x956   : > { %v1186_v53 = vadd.f32 %v1475_v51, %v1178_v52 }
 0x958   : > { %v1187_v54 = vpack.c.bf16 %v1186_v53, %v1186_v53 }
 0x95a   : > { %1585 = vmatmul.mubr.msk.bf16.vlgmr.msra.gmra.mxu1 %vm524_vm1, %v1187_v54 }
 0xa1a   : > { %v1248_v58 = vpop.f32.mrf.mxu1 }
 0xa1b   : > { %v1249_v59 = vadd.f32 %v1476_v57, %v1248_v58 }
 0xa1c   : > { %v1586_v60 = vpop.f32.mrf.mxu1 }
 0xa1d   : > { %v1254_v61 = vmax.f32 %v1249_v59, 0.0 }
 0xa1e   : > { %v1251_v62 = vpop.f32.mrf.mxu1 }
 0xa1f   : > { %v1255_v63 = vpack.c.bf16 %v1254_v61, %v1254_v61 }
 0xa20   : > { %v1587_v1 = vpop.f32.mrf.mxu1 }
 0xa21   : > { %1597 = vmatmul.mubr.msk.bf16.vlgmr.msra.gmra.mxu0 %vm1295_vm11, %v1255_v63 }
 0xae1   : > { %v1333_v2 = vpop.f32.mrf.mxu0 }
 0xae2   : > { %v1334_v3 = vadd.f32 %v1480_v0, %v1333_v2 }
 0xae3   : > { %v1598_v5 = vpop.f32.mrf.mxu0 }
 0xae4   : > { %1339 = vst.msk [vmem:[%s498_s18] sm:$0xff] %vm524_vm1, %v1334_v3 }
 0xae5   : > { %v1336_v6 = vpop.f32.mrf.mxu0 }
 0xae6   : > { %1799 = shalt.err (!%p1796_p7)
}
 0xae7   : > { %s1800_s25 = scalar_lea.hbm %s2239_s28, 128  ;;  %s1804_s21 = scalar_lea.hbm %s2295_s14, 256 }
 0xae8   : > { %p1801_p8 = scmp.ne.s32.totalorder %s2239_s28, %s1800_s25  ;;  %p1805_p0 = scmp.lt.s32.totalorder %s2239_s28, %s2295_s14 }
 0xae9   : > { %p1806_p1 = scmp.lt.s32.totalorder %s1804_s21, %s1800_s25 }
 0xaea   : > { %p1802_p13 = pnand %p1801_p8, %p2316_p12 }
 0xaeb   : > { %p1807_p3 = por %p1806_p1, %p1805_p0 }
 0xaec   : > { %p1803_p11 = pneg %p1802_p13 }
 0xaee   : > { %p1808_p10 = pnand %p1807_p3, %p1803_p11 }
 0xaf0   : > { %1811 = shalt.err (!%p1808_p10)
}
 0xaf1   : > { %1612 = dma.vmem_to_hbm [thread:$0]  (%p2316_p12), %s2241_s20, 128, %s2239_s28, %s1341_s15   ;;  %v1599_v7 = vpop.f32.mrf.mxu0 }
 0xaf2 PF: > { %s2317_s17 = sld [smem:[#allocation16_spill]]  ;;  %p1634_p2 = scmp.ge.s32.totalorder %s1854_s16, 2 }
 0xaf3   : > { %s1366_s27 = sand.u32 1, %s1842_s29  }
 0xaf4   : > { %s1367_s22 = scalar_lea.sflag [#allocation5], %s1366_s27 }
 0xaf8   : > { %p2318_p9 = scmp.ne.s32.totalorder %s2317_s17, 0 }
 0xafa   : > { %p1625_p4 = pnand %p1634_p2, %p2318_p9 }
 0xafc   : > { %p1626_p5 = pneg %p1625_p4 }
 0xafe   : > { %1837 = dma.done.wait (%p1626_p5), %s1367_s22, 128  }
 0xaff   : > { %1839 = vsyncadd (%p1626_p5), %s1367_s22, 4294967168  ;;  %s2319_s16 = sld [smem:[#allocation14_spill]]  ;;  %s2322_s29 = smov %s1846_s30 }
 0xb00   : > { %s2320_s25 = sld [smem:[#allocation13_spill]] }
 0xb01   : > { %s2321_s15 = sld [smem:[#allocation15_spill]] }
 0xb05   : > { %p26_p6 = scmp.ge.s32.totalorder %s2319_s16, 4  }
 0xb06   : > { %s2323_s30 = smov %s2320_s25 }
 0xb07   :  { %28 = sbr.rel (!%p26_p6) target bundleno = 5 (0x5), region = 124 }
 0xb0c   :  { %1372 = vsyncpa [#allocation4], 1 }
 0xb0d   :  { %1374 = vsyncpa [#allocation4 + $0x1], 1 }
 0xb0e   :  { %1375 = vsyncpa [#allocation7], 1 }
 0xb0f   :  { %1376 = vsyncpa [#allocation5], 1 }
 0xb10   :  { %1378 = vsyncpa [#allocation5 + $0x1], 1 }

</bundles_post_ra>
